<compile_context>
chip_gen: v5e
topology: v5e:2x2
jax: 0.10.0
libtpu: 0.0.40
codegen_flags: <defaults>
</compile_context>

<pallas_src>
import functools

import jax
import jax.numpy as jnp
from jax.experimental import pallas as pl
from jax.experimental.pallas import tpu as pltpu

PACK = 4      # batch rows packed per 128-lane row
LANES = 128


def _round_up(x, m):
    return ((x + m - 1) // m) * m


def _cdiv(a, b):
    return -(-a // b)


def q_critic_kernel(x_ref, w1_ref, w2_ref, wv_ref, bias_ref, out_ref, *,
                    h_lanes, out_lanes):
    """One packed batch tile: out = relu(relu(x@W1+b1)@W2+b2) @ Wv + bv.

    x_ref:    (tbp, PACK*in_pad)  bf16  (4 batch rows per sublane row)
    w*_ref:   block-diagonal packed weights, bf16 (VMEM-resident)
    bias_ref: (1, 2*h_lanes + out_lanes) f32, [b1 | b2 | bv] tiled PACK-wide
    out_ref:  (tbp, PACK) f32
    """
    x = x_ref[...]

    # Packed biases: static slices at 128-lane-aligned offsets (zero cost).
    b1 = bias_ref[:, 0:h_lanes]
    b2 = bias_ref[:, h_lanes:2 * h_lanes]
    bv = bias_ref[:, 2 * h_lanes:2 * h_lanes + out_lanes]

    h1 = jnp.maximum(
        jnp.dot(x, w1_ref[...], preferred_element_type=jnp.float32) + b1, 0.0)
    h2 = jnp.maximum(
        jnp.dot(h1.astype(w2_ref.dtype), w2_ref[...],
                preferred_element_type=jnp.float32) + b2, 0.0)
    out_ref[...] = (
        jnp.dot(h2.astype(wv_ref.dtype), wv_ref[...],
                preferred_element_type=jnp.float32) + bv)


def init_params(key, in_dim, num_hidden):
    """PyTorch-style nn.Linear init; weights stored transposed (in, out)."""
    ks = jax.random.split(key, 6)
    f32 = jnp.float32

    def lin(kw, kb, fan_in, fan_out):
        lim = 1.0 / jnp.sqrt(fan_in)
        w = jax.random.uniform(kw, (fan_in, fan_out), f32, -lim, lim)
        b = jax.random.uniform(kb, (1, fan_out), f32, -lim, lim)
        return w, b

    w1, b1 = lin(ks[0], ks[1], in_dim, num_hidden)       # fc1
    w2, b2 = lin(ks[2], ks[3], num_hidden, num_hidden)   # fc2
    wv, bv = lin(ks[4], ks[5], num_hidden, 1)            # state_value
    return (w1, b1, w2, b2, wv, bv)


def _pack_params(params):
    """Pad features to 32-multiples, replicate block-diagonally PACK times, cast bf16."""
    w1, b1, w2, b2, wv, bv = params
    in_dim, hidden = w1.shape
    sub = LANES // PACK                       # 32 features per packed slot
    in_pad = _round_up(in_dim, sub)
    h_pad = _round_up(hidden, sub)

    w1p = jnp.zeros((in_pad, h_pad), jnp.float32).at[:in_dim, :hidden].set(w1)
    w2p = jnp.zeros((h_pad, h_pad), jnp.float32).at[:hidden, :hidden].set(w2)
    wvp = jnp.zeros((h_pad, 1), jnp.float32).at[:hidden, :].set(wv)
    eye = jnp.eye(PACK, dtype=jnp.float32)
    w1b = jnp.kron(eye, w1p).astype(jnp.bfloat16)   # (PACK*in_pad, PACK*h_pad)
    w2b = jnp.kron(eye, w2p).astype(jnp.bfloat16)   # (PACK*h_pad,  PACK*h_pad)
    wvb = jnp.kron(eye, wvp).astype(jnp.bfloat16)   # (PACK*h_pad,  PACK)

    b1p = jnp.zeros((1, h_pad), jnp.float32).at[:, :hidden].set(b1)
    b2p = jnp.zeros((1, h_pad), jnp.float32).at[:, :hidden].set(b2)
    bias_pack = jnp.concatenate(
        [jnp.tile(b1p, (1, PACK)), jnp.tile(b2p, (1, PACK)),
         jnp.tile(bv, (1, PACK))], axis=1)          # (1, 2*PACK*h_pad + PACK)
    return w1b, w2b, wvb, bias_pack, in_pad, h_pad


def q_critic_forward(x, params, *, tile_rows=8192):
    """x: (bs, num_state + num_action + num_agent). Returns q: (bs, 1)."""
    bs, in_dim = x.shape
    w1b, w2b, wvb, bias_pack, in_pad, h_pad = _pack_params(params)
    x_lanes = PACK * in_pad
    h_lanes = PACK * h_pad

    # ---- batch tiling over packed rows (PACK batch rows per packed row) ----
    rows = _cdiv(bs, PACK)
    # Tile must be a multiple of 16 (bf16 sublane packing).  Tail-aware choice
    # bounds padding waste, and we force >= 2 grid steps when there is enough
    # work so v7x's two TensorCores both get a share under "parallel".
    tbp_cap = max(_round_up(_cdiv(tile_rows, PACK), 16), 16)
    n_tiles = _cdiv(rows, tbp_cap)
    if rows >= 32:
        n_tiles = max(n_tiles, 2)
    tbp = max(_round_up(_cdiv(rows, n_tiles), 16), 16)
    grid_n = _cdiv(rows, tbp)
    rows_pad = grid_n * tbp
    bs_pad = rows_pad * PACK

    # Single pad (batch + feature) -> bf16 -> pack 4 rows per 128-lane row.
    # TODO(synk): for very large misaligned batches this pad/cast is one extra
    # pass over x in HBM; align/pack the batch upstream to fuse it away.
    xp = jnp.pad(x.astype(jnp.float32),
                 ((0, bs_pad - bs), (0, in_pad - in_dim)))
    xp = xp.astype(jnp.bfloat16).reshape(rows_pad, x_lanes)

    kernel = functools.partial(q_critic_kernel, h_lanes=h_lanes, out_lanes=PACK)

    # VMEM budget: double-buffered x/out tiles + resident packed weights.
    vmem_need = (2 * tbp * x_lanes * 2              # x tiles (bf16)
                 + 2 * tbp * LANES * 4              # out tiles (lane-padded f32)
                 + 2 * (w1b.size + w2b.size) * 2 + 2 * h_lanes * LANES * 2
                 + 2 * 8 * _round_up(bias_pack.shape[1], LANES) * 4)
    vmem_limit = int(min(max(2 * vmem_need, 32 * 1024 * 1024),
                         48 * 1024 * 1024))

    cost = pl.CostEstimate(
        flops=2 * rows_pad * (x_lanes * h_lanes + h_lanes * h_lanes
                              + h_lanes * PACK),
        transcendentals=0,
        bytes_accessed=int(xp.size * 2 + rows_pad * PACK * 4
                           + (w1b.size + w2b.size + wvb.size) * 2
                           + bias_pack.size * 4))

    out = pl.pallas_call(
        kernel,
        out_shape=jax.ShapeDtypeStruct((rows_pad, PACK), jnp.float32),
        grid=(grid_n,),
        in_specs=[
            # Streamed packed-activation tile (double-buffered by Pallas).
            pl.BlockSpec((tbp, x_lanes), lambda i: (i, 0)),
            # Weights / packed biases: constant index_map -> VMEM-resident.
            pl.BlockSpec((x_lanes, h_lanes), lambda i: (0, 0)),
            pl.BlockSpec((h_lanes, h_lanes), lambda i: (0, 0)),
            pl.BlockSpec((h_lanes, PACK), lambda i: (0, 0)),
            pl.BlockSpec((1, 2 * h_lanes + PACK), lambda i: (0, 0)),
        ],
        out_specs=pl.BlockSpec((tbp, PACK), lambda i: (i, 0)),
        compiler_params=pltpu.CompilerParams(
            dimension_semantics=("parallel",),
            vmem_limit_bytes=vmem_limit),
        cost_estimate=cost,
    )(xp, w1b, w2b, wvb, bias_pack)

    # Row-major flatten of (rows_pad, PACK) restores the original batch order;
    # zero-padded (garbage) rows are sliced off here.
    return out.reshape(bs_pad, 1)[:bs]


def q_critic_reference(x, params):
    """Pure-JAX f32 reference mirroring the PyTorch module."""
    w1, b1, w2, b2, wv, bv = params
    h1 = jnp.maximum(x @ w1 + b1, 0.0)
    h2 = jnp.maximum(h1 @ w2 + b2, 0.0)
    return h2 @ wv + bv


def q_critic_reference_bf16(x, params):
    """Mirrors the kernel's bf16 input rounding (f32 accumulation)."""
    w1, b1, w2, b2, wv, bv = params
    c = lambda a: a.astype(jnp.bfloat16).astype(jnp.float32)
    h1 = jnp.maximum(c(x) @ c(w1) + b1, 0.0)
    h2 = jnp.maximum(c(h1) @ c(w2) + b2, 0.0)
    return c(h2) @ c(wv) + bv


if __name__ == "__main__":
    # input dim = num_state + num_action + num_agent.
    num_state, num_action, num_agent, num_hidden = 16, 6, 4, 32
    in_dim = num_state + num_action + num_agent          # 26

    key = jax.random.PRNGKey(0)
    kp, kx1, kx2 = jax.random.split(key, 3)
    params = init_params(kp, in_dim, num_hidden)

    # Case 1: tiny batch (single tile).
    bs1 = 8
    x1 = jax.random.normal(kx1, (bs1, in_dim), jnp.float32)
    q1 = jax.block_until_ready(q_critic_forward(x1, params))
    assert q1.shape == (bs1, 1), q1.shape
    r1 = q_critic_reference_bf16(x1, params)
    assert jnp.allclose(q1, r1, atol=2e-3, rtol=2e-3), (
        float(jnp.max(jnp.abs(q1 - r1))))
    assert jnp.allclose(q1, q_critic_reference(x1, params),
                        atol=5e-2, rtol=5e-2)

    # Case 2: batch not a multiple of the tile -> multi-step grid + padding.
    bs2 = 200
    x2 = jax.random.normal(kx2, (bs2, in_dim), jnp.float32)
    q2 = jax.block_until_ready(q_critic_forward(x2, params, tile_rows=64))
    assert q2.shape == (bs2, 1), q2.shape
    r2 = q_critic_reference_bf16(x2, params)
    assert jnp.allclose(q2, r2, atol=2e-3, rtol=2e-3), (
        float(jnp.max(jnp.abs(q2 - r2))))
    assert jnp.allclose(q2, q_critic_reference(x2, params),
                        atol=5e-2, rtol=5e-2)

    print("KERNEL_OK")
</pallas_src>

<mosaic_0001>
module attributes {stable_mosaic.version = 11 : i64} {
  func.func @q_critic_kernel(%arg0: i32, %arg1: memref<16x128xbf16, #tpu.memory_space<vmem>>, %arg2: memref<128x128xbf16, #tpu.memory_space<vmem>>, %arg3: memref<128x128xbf16, #tpu.memory_space<vmem>>, %arg4: memref<128x4xbf16, #tpu.memory_space<vmem>>, %arg5: memref<1x260xf32, #tpu.memory_space<vmem>>, %arg6: memref<16x4xf32, #tpu.memory_space<vmem>>) attributes {dimension_semantics = [#tpu.dimension_semantics<parallel>], iteration_bounds = array<i64: 1>, scalar_prefetch = 0 : i64, scratch_operands = 0 : i64, tpu.core_type = #tpu.core_type<tc>, window_params = [{transform_indices = @transform_0, window_bounds = array<i64: 16, 128>}, {pipeline_mode = #tpu.pipeline_mode<synchronous>, transform_indices = @transform_1, window_bounds = array<i64: 128, 128>}, {pipeline_mode = #tpu.pipeline_mode<synchronous>, transform_indices = @transform_2, window_bounds = array<i64: 128, 128>}, {pipeline_mode = #tpu.pipeline_mode<synchronous>, transform_indices = @transform_3, window_bounds = array<i64: 128, 4>}, {pipeline_mode = #tpu.pipeline_mode<synchronous>, transform_indices = @transform_4, window_bounds = array<i64: 1, 260>}, {transform_indices = @transform_5, window_bounds = array<i64: 16, 4>}]} {
    %c0 = arith.constant 0 : index
    %c0_0 = arith.constant 0 : index
    %0 = vector.load %arg1[%c0, %c0_0] : memref<16x128xbf16, #tpu.memory_space<vmem>>, vector<16x128xbf16>
    %c0_1 = arith.constant 0 : index
    %c0_2 = arith.constant 0 : index
    %1 = vector.load %arg5[%c0_1, %c0_2] : memref<1x260xf32, #tpu.memory_space<vmem>>, vector<1x128xf32>
    %c0_3 = arith.constant 0 : index
    %c128 = arith.constant 128 : index
    %2 = vector.load %arg5[%c0_3, %c128] : memref<1x260xf32, #tpu.memory_space<vmem>>, vector<1x128xf32>
    %c0_4 = arith.constant 0 : index
    %c256 = arith.constant 256 : index
    %3 = vector.load %arg5[%c0_4, %c256] : memref<1x260xf32, #tpu.memory_space<vmem>>, vector<1x4xf32>
    %c0_5 = arith.constant 0 : index
    %c0_6 = arith.constant 0 : index
    %4 = vector.load %arg2[%c0_5, %c0_6] : memref<128x128xbf16, #tpu.memory_space<vmem>>, vector<128x128xbf16>
    %cst = arith.constant dense<0.000000e+00> : vector<16x128xf32>
    %5 = tpu.matmul %0, %4, %cst {dimension_numbers = #tpu.dot_dimension_numbers<[1], [0], [0], [1], [0, 0, 1, 1], [], []>} : vector<16x128xbf16>, vector<128x128xbf16>, vector<16x128xf32> -> vector<16x128xf32>
    %6 = vector.broadcast %1 : vector<1x128xf32> to vector<16x128xf32>
    %7 = arith.addf %5, %6 : vector<16x128xf32>
    %cst_7 = arith.constant 0.000000e+00 : f32
    %8 = vector.broadcast %cst_7 : f32 to vector<16x128xf32>
    %9 = arith.maximumf %7, %8 : vector<16x128xf32>
    %10 = arith.truncf %9 : vector<16x128xf32> to vector<16x128xbf16>
    %c0_8 = arith.constant 0 : index
    %c0_9 = arith.constant 0 : index
    %11 = vector.load %arg3[%c0_8, %c0_9] : memref<128x128xbf16, #tpu.memory_space<vmem>>, vector<128x128xbf16>
    %cst_10 = arith.constant dense<0.000000e+00> : vector<16x128xf32>
    %12 = tpu.matmul %10, %11, %cst_10 {dimension_numbers = #tpu.dot_dimension_numbers<[1], [0], [0], [1], [0, 0, 1, 1], [], []>} : vector<16x128xbf16>, vector<128x128xbf16>, vector<16x128xf32> -> vector<16x128xf32>
    %13 = vector.broadcast %2 : vector<1x128xf32> to vector<16x128xf32>
    %14 = arith.addf %12, %13 : vector<16x128xf32>
    %cst_11 = arith.constant 0.000000e+00 : f32
    %15 = vector.broadcast %cst_11 : f32 to vector<16x128xf32>
    %16 = arith.maximumf %14, %15 : vector<16x128xf32>
    %17 = arith.truncf %16 : vector<16x128xf32> to vector<16x128xbf16>
    %c0_12 = arith.constant 0 : index
    %c0_13 = arith.constant 0 : index
    %18 = vector.load %arg4[%c0_12, %c0_13] : memref<128x4xbf16, #tpu.memory_space<vmem>>, vector<128x4xbf16>
    %cst_14 = arith.constant dense<0.000000e+00> : vector<16x4xf32>
    %19 = tpu.matmul %17, %18, %cst_14 {dimension_numbers = #tpu.dot_dimension_numbers<[1], [0], [0], [1], [0, 0, 1, 1], [], []>} : vector<16x128xbf16>, vector<128x4xbf16>, vector<16x4xf32> -> vector<16x4xf32>
    %20 = vector.broadcast %3 : vector<1x4xf32> to vector<16x4xf32>
    %21 = arith.addf %19, %20 : vector<16x4xf32>
    %c0_15 = arith.constant 0 : index
    %c0_16 = arith.constant 0 : index
    %22 = vector.load %arg6[%c0_15, %c0_16] : memref<16x4xf32, #tpu.memory_space<vmem>>, vector<16x4xf32>
    tpu.vector_store %arg6[%c0_15, %c0_16], %21 {strides = array<i32>} : memref<16x4xf32, #tpu.memory_space<vmem>>, vector<16x4xf32>,
    return
  }
  func.func @transform_0(%arg0: i32) -> (i32, i32) {
    %c0_i32 = arith.constant 0 : i32
    %c0_i32_0 = arith.constant 0 : i32
    return %arg0, %c0_i32 : i32, i32
  }
  func.func @transform_1(%arg0: i32) -> (i32, i32) {
    %c0_i32 = arith.constant 0 : i32
    %c0_i32_0 = arith.constant 0 : i32
    %c0_i32_1 = arith.constant 0 : i32
    return %c0_i32, %c0_i32_0 : i32, i32
  }
  func.func @transform_2(%arg0: i32) -> (i32, i32) {
    %c0_i32 = arith.constant 0 : i32
    %c0_i32_0 = arith.constant 0 : i32
    %c0_i32_1 = arith.constant 0 : i32
    return %c0_i32, %c0_i32_0 : i32, i32
  }
  func.func @transform_3(%arg0: i32) -> (i32, i32) {
    %c0_i32 = arith.constant 0 : i32
    %c0_i32_0 = arith.constant 0 : i32
    %c0_i32_1 = arith.constant 0 : i32
    return %c0_i32, %c0_i32_0 : i32, i32
  }
  func.func @transform_4(%arg0: i32) -> (i32, i32) {
    %c0_i32 = arith.constant 0 : i32
    %c0_i32_0 = arith.constant 0 : i32
    %c0_i32_1 = arith.constant 0 : i32
    return %c0_i32, %c0_i32_0 : i32, i32
  }
  func.func @transform_5(%arg0: i32) -> (i32, i32) {
    %c0_i32 = arith.constant 0 : i32
    %c0_i32_0 = arith.constant 0 : i32
    return %arg0, %c0_i32 : i32, i32
  }
}

</mosaic_0001>

<bundles_post_ra>
// kernel: tpu_custom_call.1
= control target key start
LH: loop header
LB: loop body
LE: loop exit
PB: predicated region body
PF: predicated region fallthrough
CT: control target
= control target key end

     0   :  { %10 = vsyncpa [#allocation3], 0  ;;  %s608_s0 = inlined_call_operand.hbm [shape: bf16[16,128], index: 0, kind: input, shape index: {}]   ;;  %s609_s1 = inlined_call_operand.vmem [shape: bf16[128,128], index: 1, kind: input, shape index: {}]   ;;  %s610_s2 = inlined_call_operand.hbm [shape: bf16[128,128], index: 2, kind: input, shape index: {}]   ;;  %s611_s3 = inlined_call_operand.vmem [shape: bf16[128,4], index: 3, kind: input, shape index: {}]   ;;  %s612_s4 = inlined_call_operand.vmem [shape: f32[1,260], index: 4, kind: input, shape index: {}]   ;;  %s613_s5 = inlined_call_operand.vmem [shape: f32[16,4], index: 5, kind: output, shape index: {}]  }
   0x1   :  { %s16_s20 = sshll.u32 %s608_s0, 4  ;;  %s17_s20 = int_to_ptr.hbm [resolvable:$true] %s16_s20 }
   0x2   :  { %11 = vsyncpa [#allocation5], 0  ;;  %s505_s21 = smov [#allocation2]   ;;  %s31_s25 = sshll.u32 %s610_s2, 4  ;;  %s32_s25 = int_to_ptr.hbm [resolvable:$true] %s31_s25 }
   0x3   :  { %s18_s22 = sshll.u32 %s505_s21, 4  ;;  %s506_s26 = smov 64   ;;  %s19_s22 = int_to_ptr.vmem [resolvable:$true] %s18_s22 }
   0x4   :  { %s507_s27 = smov 4   ;;  %s508_s28 = smov [#allocation4]  }
   0x5   :  { %24 = dma.hbm_to_vmem [thread:$0]  %s17_s20, 128, %s19_s22, [#allocation3], %s506_s26, %s506_s26, %s507_s27  }
   0x6   :  { %s33_s29 = sshll.u32 %s508_s28, 4  ;;  %s34_s29 = int_to_ptr.vmem [resolvable:$true] %s33_s29 }
   0x7   :  { %39 = dma.hbm_to_vmem [thread:$0]  %s32_s25, 1024, %s34_s29, [#allocation5], %s506_s26, %s506_s26, %s507_s27  }
   0x8   :  { %501 = dma.done.wait [#allocation3], 128  }
   0x9   :  { %502 = vsyncadd [#allocation3], 4294967168 }
   0xa   :  { %503 = dma.done.wait [#allocation5], 1024  }
   0xb   :  { %504 = vsyncadd [#allocation5], 4294966272  ;;  %v429_v0 = vld [vmem:[%s609_s1 + $0x38] sm:$0xff]  ;;  %v428_v1 = vld [vmem:[%s609_s1 + $0x30] sm:$0xff]  ;;  %vm312_vm0 = vcmask 31744  }
   0xc   :  { %130 = vmatpush.bf16.msra.mxu0 %v429_v0  ;;  %v437_v2 = vld [vmem:[#allocation4 + $0x38] sm:$0xff]  ;;  %v436_v3 = vld [vmem:[#allocation4 + $0x30] sm:$0xff]  ;;  %v427_v4 = vld [vmem:[%s609_s1 + $0x28] sm:$0xff] }
   0xd   :  { %214 = vmatpush.bf16.msra.mxu1 %v437_v2  ;;  %v435_v5 = vld [vmem:[#allocation4 + $0x28] sm:$0xff]  ;;  %v426_v6 = vld [vmem:[%s609_s1 + $0x20] sm:$0xff]  ;;  %v434_v7 = vld [vmem:[#allocation4 + $0x20] sm:$0xff] }
   0xe   :  { %v425_v8 = vld [vmem:[%s609_s1 + $0x18] sm:$0xff]  ;;  %v424_v9 = vld [vmem:[%s609_s1 + $0x10] sm:$0xff]  ;;  %v423_v10 = vld [vmem:[%s609_s1 + $0x8] sm:$0xff] }
   0xf   :  { %v422_v11 = vld [vmem:[%s609_s1] sm:$0xff]  ;;  %v432_v14 = vld [vmem:[#allocation4 + $0x10] sm:$0xff]  ;;  %v431_v15 = vld [vmem:[#allocation4 + $0x8] sm:$0xff] }
  0x10   :  { %131 = vmatpush.bf16.msra.mxu0 %v428_v1  ;;  %v421_v12 = vld [vmem:[#allocation2] sm:$0xff]  ;;  %v430_v16 = vld [vmem:[#allocation4] sm:$0xff]  ;;  %v445_v17 = vld [vmem:[%s611_s3 + $0x38] sm:$0xff] }
  0x11   :  { %215 = vmatpush.bf16.msra.mxu1 %v436_v3  ;;  %v433_v13 = vld [vmem:[#allocation4 + $0x18] sm:$0xff]  ;;  %298 = vmatpush.bf16.msra.mxu2 %v445_v17  ;;  %v444_v18 = vld [vmem:[%s611_s3 + $0x30] sm:$0xff]  ;;  %v443_v19 = vld [vmem:[%s611_s3 + $0x28] sm:$0xff] }
  0x12   :  { %v442_v20 = vld [vmem:[%s611_s3 + $0x20] sm:$0xff]  ;;  %v441_v29 = vld [vmem:[%s611_s3 + $0x18] sm:$0xff]  ;;  %v440_v30 = vld [vmem:[%s611_s3 + $0x10] sm:$0xff] }
  0x13   :  { %v450_v22 = vld [vmem:[%s612_s4] ss:$0 sm:$0xff]  ;;  %v439_v31 = vld [vmem:[%s611_s3 + $0x8] sm:$0xff]  ;;  %v451_v34 = vld [vmem:[%s612_s4 + $0x1] ss:$0 sm:$0xff] }
  0x14   :  { %132 = vmatpush.bf16.msra.mxu0 %v427_v4  ;;  %v438_v32 = vld [vmem:[%s611_s3] sm:$0xff] }
  0x15   :  { %216 = vmatpush.bf16.msra.mxu1 %v435_v5  ;;  %299 = vmatpush.bf16.msra.mxu2 %v444_v18  ;;  %v452_v41 = vld [vmem:[%s612_s4 + $0x2] ss:$0 sm:$0xff] }
  0x18   :  { %133 = vmatpush.bf16.msra.mxu0 %v426_v6 }
  0x19   :  { %217 = vmatpush.bf16.msra.mxu1 %v434_v7  ;;  %300 = vmatpush.bf16.msra.mxu2 %v443_v19 }
  0x1c   :  { %134 = vmatpush.bf16.msra.mxu0 %v425_v8 }
  0x1d   :  { %218 = vmatpush.bf16.msra.mxu1 %v433_v13  ;;  %301 = vmatpush.bf16.msra.mxu2 %v442_v20 }
  0x20   :  { %135 = vmatpush.bf16.msra.mxu0 %v424_v9 }
  0x21   :  { %219 = vmatpush.bf16.msra.mxu1 %v432_v14  ;;  %302 = vmatpush.bf16.msra.mxu2 %v441_v29 }
  0x24   :  { %136 = vmatpush.bf16.msra.mxu0 %v423_v10 }
  0x25   :  { %220 = vmatpush.bf16.msra.mxu1 %v431_v15  ;;  %303 = vmatpush.bf16.msra.mxu2 %v440_v30 }
  0x28   :  { %137 = vmatpush.bf16.msra.mxu0 %v422_v11 }
  0x29   :  { %221 = vmatpush.bf16.msra.mxu1 %v430_v16  ;;  %304 = vmatpush.bf16.msra.mxu2 %v439_v31 }
  0x2b   :  { %138 = vmatmul.bf16.vlgmr.msra.gmra.mxu0 %v421_v12 }
  0x2d   :  { %305 = vmatpush.bf16.msra.mxu2 %v438_v32 }
  0xa8   :  { %v139_v21 = vpop.f32.mrf.mxu0 }
  0xa9   :  { %v140_v23 = vadd.f32 %v450_v22, %v139_v21 }
  0xab   :  { %v144_v26 = vmax.f32 %v140_v23, 0.0 }
  0xb0   :  { %v141_v24 = vpop.f32.mrf.mxu0 }
  0xb1   :  { %v142_v25 = vadd.f32 %v450_v22, %v141_v24 }
  0xb3   :  { %v145_v27 = vmax.f32 %v142_v25, 0.0 }
  0xb5   :  { %v146_v28 = vpack.c.bf16 %v145_v27, %v144_v26 }
  0xb7   :  { %222 = vmatmul.bf16.vlgmr.msra.gmra.mxu1 %v146_v28 }
 0x134   :  { %v223_v33 = vpop.f32.mrf.mxu1 }
 0x135   :  { %v224_v35 = vadd.f32 %v451_v34, %v223_v33 }
 0x137   :  { %v228_v38 = vmax.f32 %v224_v35, 0.0 }
 0x13c   :  { %v225_v36 = vpop.f32.mrf.mxu1 }
 0x13d   :  { %v226_v37 = vadd.f32 %v451_v34, %v225_v36 }
 0x13f   :  { %v229_v39 = vmax.f32 %v226_v37, 0.0 }
 0x141   :  { %v230_v40 = vpack.c.bf16 %v229_v39, %v228_v38 }
 0x143   :  { %306 = vmatmul.bf16.vlgmr.msra.gmra.mxu2 %v230_v40 }
 0x1c6   :  { %v307_v42 = vpop.f32.mrf.mxu2 }
 0x1c7   :  { %v308_v43 = vadd.f32 %v452_v41, %v307_v42 }
 0x1c9   :  { %313 = vst.msk [vmem:[%s613_s5] sm:$0xff] %vm312_vm0, %v308_v43 }
 0x1ce   :  { %v309_v44 = vpop.f32.mrf.mxu2 }
 0x1cf   :  { %v310_v45 = vadd.f32 %v452_v41, %v309_v44 }
 0x1d1   :  { %314 = vst.msk [vmem:[%s613_s5 + $0x8] sm:$0xff] %vm312_vm0, %v310_v45 }
 0x1d2   :  { %319 = vsyncpa [#allocation3], 1 }
 0x1d3   :  { %320 = vsyncpa [#allocation5], 1 }

</bundles_post_ra>
